<compile_context>
chip_gen: v5e
topology: v5e:2x2
jax: 0.10.0
libtpu: 0.0.40
codegen_flags: <defaults>
</compile_context>

<pallas_src>
import jax
import jax.numpy as jnp
from jax.experimental import pallas as pl
from jax.experimental.pallas import tpu as pltpu

# Small-scale stand-ins for ENCODERS['resnet18']['features'] (=512) and n_classes.
FEATURES = 128
N_CLASSES = 10
LANE = 128


def _round_up(x, m):
    return ((x + m - 1) // m) * m


def _cdiv(a, b):
    return -(-a // b)


def _divisors(n):
    ds = set()
    i = 1
    while i * i <= n:
        if n % i == 0:
            ds.add(i)
            ds.add(n // i)
        i += 1
    return sorted(ds)


def head_kernel(feat_ref, w_ref, b_ref, out_ref, acc_ref):
    # feat_ref: [TB, TK]   feature tile, NCHW viewed as [B, C*HW] (free reshape)
    # w_ref:    [TK, NPAD] expanded fc weight^T, pre-scaled by 1/(H*W), zero-padded
    # b_ref:    [1, NPAD]  fc bias, zero-padded
    # out_ref:  [TB, NPAD] lane-dense logits tile
    # acc_ref:  [TB, NPAD] f32 accumulator (resident across the K grid axis)
    k = pl.program_id(1)

    @pl.when(k == 0)
    def _():
        acc_ref[...] = jnp.zeros_like(acc_ref)

    # AdaptiveAvgPool2d((1,1)) + flatten(1) + Linear fused into one MXU matmul:
    # the 1/(H*W) average is folded into w_ref, so summing over K = C*H*W inside
    # the systolic array performs pooling and the fc layer together.  Operands
    # stay in their native dtype; accumulation is f32.  Dropout is identity at
    # inference.
    acc_ref[...] += jnp.dot(feat_ref[...], w_ref[...],
                            preferred_element_type=jnp.float32)

    @pl.when(k == pl.num_programs(1) - 1)
    def _():
        out_ref[...] = (acc_ref[...] + b_ref[...]).astype(out_ref.dtype)


def signs_classifier_head(features_nchw, fc_w, fc_b, *,
                          block_b=None, block_k=None, vmem_budget_bytes=None):
    """features_nchw: [B, C, H, W]; fc_w: [n_classes, C]; fc_b: [n_classes]."""
    B, C, H, W = features_nchw.shape
    n_classes = fc_w.shape[0]
    HW = H * W
    K = C * HW
    n_pad = _round_up(n_classes, LANE)                                   # >= 128

    # Free reshape of the contiguous NCHW map -- no extra HBM pass.
    feat2d = features_nchw.reshape(B, K)
    feat_dtype = feat2d.dtype
    feat_isz = jnp.dtype(feat_dtype).itemsize

    # Expanded pool+fc weight: w_exp[c*HW + hw, n] = fc_w[n, c] / HW, classes
    # zero-padded to a full lane width.  bf16 features -> bf16 weights (halves
    # resident weight VMEM, f32 accumulation keeps accuracy); f32 stays f32.
    w_dtype = jnp.bfloat16 if feat_dtype == jnp.bfloat16 else jnp.float32
    w_exp = jnp.repeat(fc_w.astype(jnp.float32).T, HW, axis=0) * (1.0 / float(HW))
    w_exp = jnp.pad(w_exp, ((0, 0), (0, n_pad - n_classes))).astype(w_dtype)   # [K, NPAD]
    bias = jnp.pad(fc_b.astype(jnp.float32), (0, n_pad - n_classes)).reshape(1, n_pad)
    w_isz = jnp.dtype(w_dtype).itemsize

    # ---- VMEM budget & footprint model (includes (sublane, lane) padding). ----
    try:
        vmem_cap = int(pltpu.get_tpu_info().vmem_capacity_bytes)
    except Exception:
        vmem_cap = 64 << 20          # conservative default: v7x per-TensorCore VMEM
    if vmem_budget_bytes is None:
        # ~65% of VMEM: ~42 MiB on v7x (64 MiB), ~83 MiB on v5e/v6e (128 MiB).
        vmem_budget_bytes = min(int(vmem_cap * 0.65), 96 << 20)

    sub_f = max(8, 32 // feat_isz)   # sublane packing multiple of the feature tile
    sub_w = max(8, 32 // w_isz)

    def footprint(tb, tk):
        f = 2 * _round_up(tb, sub_f) * _round_up(tk, LANE) * feat_isz   # dbl-buf features
        w = 2 * _round_up(tk, sub_w) * n_pad * w_isz                    # dbl-buf weight tile
        o = 2 * _round_up(tb, 8) * n_pad * 4                            # dbl-buf f32 output
        a = _round_up(tb, 8) * n_pad * 4                                # accumulator scratch
        b = 2 * 8 * n_pad * 4                                           # bias
        return f + w + o + a + b

    def fits(tb, tk):
        return footprint(tb, tk) <= vmem_budget_bytes

    # ---- batch tile: big tiles for bandwidth, >= 2 tiles so both v7x TCs work. ----
    if block_b is not None:
        tb = int(block_b)
    else:
        if B >= 64:
            tb = min(512, _round_up(_cdiv(B, 4), 8))      # >= 4 batch tiles
        elif B >= 16:
            tb = _round_up(_cdiv(B, 2), 8)                # >= 2 batch tiles (v7x megacore)
        else:
            tb = B                                        # tiny batch: single full tile
        # Shrink (never below 64 rows / the batch itself) if the full-K tile
        # would overflow the VMEM budget; further pressure is handled by the
        # K reduction axis below, not by tiny batch tiles.
        tb_floor = min(64, tb)
        while tb > tb_floor and not fits(tb, K):
            tb = max(tb_floor, _round_up(max(tb // 2, 1), 8))

    # ---- reduction (K) tile: split only when the full-K tile does not fit. ----
    if block_k is not None:
        tk = int(block_k)
        assert K % tk == 0 and (tk == K or tk % LANE == 0), "block_k must divide K and be lane-aligned"
    elif fits(tb, K):
        tk = K
    else:
        tk = K
        if K % LANE == 0:
            units = K // LANE
            for d in sorted(_divisors(units), reverse=True):
                cand = d * LANE
                if cand < K and fits(tb, cand):
                    tk = cand
                    break
        # If no suitable divisor exists, fall back to the full-K tile and rely on
        # the raised vmem_limit below.

    grid_b = _cdiv(B, tb)
    grid_k = _cdiv(K, tk)

    est = footprint(tb, tk)
    vmem_limit = int(min(max(est + (4 << 20), 16 << 20),
                         max(vmem_cap - (4 << 20), 16 << 20)))

    out_padded = pl.pallas_call(
        head_kernel,
        out_shape=jax.ShapeDtypeStruct((B, n_pad), jnp.float32),
        grid_spec=pltpu.PrefetchScalarGridSpec(
            num_scalar_prefetch=0,
            grid=(grid_b, grid_k),                         # reduction axis last
            in_specs=[
                pl.BlockSpec((tb, tk), lambda i, k: (i, k)),
                pl.BlockSpec((tk, n_pad), lambda i, k: (k, 0)),
                pl.BlockSpec((1, n_pad), lambda i, k: (0, 0)),
            ],
            out_specs=pl.BlockSpec((tb, n_pad), lambda i, k: (i, 0)),
            scratch_shapes=[pltpu.VMEM((tb, n_pad), jnp.float32)],
        ),
        compiler_params=pltpu.CompilerParams(
            dimension_semantics=("parallel", "arbitrary"),  # batch tiles across v7x TCs
            vmem_limit_bytes=vmem_limit,
        ),
    )(feat2d, w_exp, bias)

    # Drop the zero-padded class lanes.
    return out_padded[:, :n_classes]


if __name__ == "__main__":
    key = jax.random.PRNGKey(0)
    kf, kw, kb = jax.random.split(key, 3)

    B, C, H, W = 2, FEATURES, 4, 4
    # TODO(synk): the pretrained torchvision encoder (resnet18.forward_features)
    # has no clean in-script Pallas equivalent; a synthetic feature map stands in
    # for its output here.
    features = jax.random.normal(kf, (B, C, H, W), dtype=jnp.float32)

    # Deterministic Linear(features, n_classes) parameters.
    fc_w = jax.random.normal(kw, (N_CLASSES, C), dtype=jnp.float32) * 0.02
    fc_b = jax.random.normal(kb, (N_CLASSES,), dtype=jnp.float32) * 0.02

    # Pure-JAX reference of the same forward (pool -> dropout(id) -> fc).
    ref = features.mean(axis=(2, 3)) @ fc_w.T + fc_b

    # Default path (single full-K tile, fused pool+fc MXU matmul).
    out = signs_classifier_head(features, fc_w, fc_b)
    out = jax.block_until_ready(out)
    assert out.shape == (B, N_CLASSES)
    assert jnp.allclose(out, ref, atol=1e-4, rtol=1e-4), "kernel != reference"

    # Also exercise the K-reduction grid path (used automatically when the
    # feature tile would not fit VMEM, e.g. resnet50-sized features on v7x).
    out_split = signs_classifier_head(features, fc_w, fc_b, block_k=512)
    out_split = jax.block_until_ready(out_split)
    assert jnp.allclose(out_split, ref, atol=1e-4, rtol=1e-4), "K-split kernel != reference"

    print("KERNEL_OK")
</pallas_src>

<mosaic_0001>
module attributes {stable_mosaic.version = 11 : i64} {
  func.func @head_kernel(%arg0: i32, %arg1: i32, %arg2: memref<2x2048xf32, #tpu.memory_space<vmem>>, %arg3: memref<2048x128xf32, #tpu.memory_space<vmem>>, %arg4: memref<1x128xf32, #tpu.memory_space<vmem>>, %arg5: memref<2x128xf32, #tpu.memory_space<vmem>>, %arg6: memref<2x128xf32, #tpu.memory_space<vmem>>) attributes {dimension_semantics = [#tpu.dimension_semantics<parallel>, #tpu.dimension_semantics<arbitrary>], iteration_bounds = array<i64: 1, 1>, scalar_prefetch = 0 : i64, scratch_operands = 1 : i64, tpu.core_type = #tpu.core_type<tc>, window_params = [{transform_indices = @transform_0, window_bounds = array<i64: 2, 2048>}, {transform_indices = @transform_1, window_bounds = array<i64: 2048, 128>}, {pipeline_mode = #tpu.pipeline_mode<synchronous>, transform_indices = @transform_2, window_bounds = array<i64: 1, 128>}, {transform_indices = @transform_3, window_bounds = array<i64: 2, 128>}]} {
    %c0_i32 = arith.constant 0 : i32
    %0 = arith.cmpi eq, %arg1, %c0_i32 : i32
    %1 = arith.extui %0 : i1 to i32
    %c0_i32_0 = arith.constant 0 : i32
    %2 = arith.cmpi ne, %1, %c0_i32_0 : i32
    scf.if %2 {
      %cst_10 = arith.constant 0.000000e+00 : f32
      %12 = vector.broadcast %cst_10 : f32 to vector<2x128xf32>
      %c0_11 = arith.constant 0 : index
      %c0_12 = arith.constant 0 : index
      %13 = vector.load %arg6[%c0_11, %c0_12] : memref<2x128xf32, #tpu.memory_space<vmem>>, vector<2x128xf32>
      tpu.vector_store %arg6[%c0_11, %c0_12], %12 {strides = array<i32>} : memref<2x128xf32, #tpu.memory_space<vmem>>, vector<2x128xf32>,
    } else {
    }
    %c0 = arith.constant 0 : index
    %c0_1 = arith.constant 0 : index
    %3 = vector.load %arg6[%c0, %c0_1] : memref<2x128xf32, #tpu.memory_space<vmem>>, vector<2x128xf32>
    %c0_2 = arith.constant 0 : index
    %c0_3 = arith.constant 0 : index
    %4 = vector.load %arg2[%c0_2, %c0_3] : memref<2x2048xf32, #tpu.memory_space<vmem>>, vector<2x2048xf32>
    %c0_4 = arith.constant 0 : index
    %c0_5 = arith.constant 0 : index
    %5 = vector.load %arg3[%c0_4, %c0_5] : memref<2048x128xf32, #tpu.memory_space<vmem>>, vector<2048x128xf32>
    %cst = arith.constant dense<0.000000e+00> : vector<2x128xf32>
    %6 = tpu.matmul %4, %5, %cst {dimension_numbers = #tpu.dot_dimension_numbers<[1], [0], [0], [1], [0, 0, 1, 1], [], []>} : vector<2x2048xf32>, vector<2048x128xf32>, vector<2x128xf32> -> vector<2x128xf32>
    %7 = arith.addf %3, %6 : vector<2x128xf32>
    %c0_6 = arith.constant 0 : index
    %c0_7 = arith.constant 0 : index
    %8 = vector.load %arg6[%c0_6, %c0_7] : memref<2x128xf32, #tpu.memory_space<vmem>>, vector<2x128xf32>
    tpu.vector_store %arg6[%c0_6, %c0_7], %7 {strides = array<i32>} : memref<2x128xf32, #tpu.memory_space<vmem>>, vector<2x128xf32>,
    %c0_i32_8 = arith.constant 0 : i32
    %9 = arith.cmpi eq, %arg1, %c0_i32_8 : i32
    %10 = arith.extui %9 : i1 to i32
    %c0_i32_9 = arith.constant 0 : i32
    %11 = arith.cmpi ne, %10, %c0_i32_9 : i32
    scf.if %11 {
      %c0_10 = arith.constant 0 : index
      %c0_11 = arith.constant 0 : index
      %12 = vector.load %arg6[%c0_10, %c0_11] : memref<2x128xf32, #tpu.memory_space<vmem>>, vector<2x128xf32>
      %c0_12 = arith.constant 0 : index
      %c0_13 = arith.constant 0 : index
      %13 = vector.load %arg4[%c0_12, %c0_13] : memref<1x128xf32, #tpu.memory_space<vmem>>, vector<1x128xf32>
      %14 = vector.broadcast %13 : vector<1x128xf32> to vector<2x128xf32>
      %15 = arith.addf %12, %14 : vector<2x128xf32>
      %c0_14 = arith.constant 0 : index
      %c0_15 = arith.constant 0 : index
      %16 = vector.load %arg5[%c0_14, %c0_15] : memref<2x128xf32, #tpu.memory_space<vmem>>, vector<2x128xf32>
      tpu.vector_store %arg5[%c0_14, %c0_15], %15 {strides = array<i32>} : memref<2x128xf32, #tpu.memory_space<vmem>>, vector<2x128xf32>,
    } else {
    }
    return
  }
  func.func @transform_0(%arg0: i32, %arg1: i32) -> (i32, i32) {
    %c0_i32 = arith.constant 0 : i32
    return %arg0, %arg1 : i32, i32
  }
  func.func @transform_1(%arg0: i32, %arg1: i32) -> (i32, i32) {
    %c0_i32 = arith.constant 0 : i32
    %c0_i32_0 = arith.constant 0 : i32
    return %arg1, %c0_i32 : i32, i32
  }
  func.func @transform_2(%arg0: i32, %arg1: i32) -> (i32, i32) {
    %c0_i32 = arith.constant 0 : i32
    %c0_i32_0 = arith.constant 0 : i32
    %c0_i32_1 = arith.constant 0 : i32
    return %c0_i32, %c0_i32_0 : i32, i32
  }
  func.func @transform_3(%arg0: i32, %arg1: i32) -> (i32, i32) {
    %c0_i32 = arith.constant 0 : i32
    %c0_i32_0 = arith.constant 0 : i32
    return %arg0, %c0_i32 : i32, i32
  }
}

</mosaic_0001>

<bundles_post_ra>
// kernel: tpu_custom_call.1
= control target key start
LH: loop header
LB: loop body
LE: loop exit
PB: predicated region body
PF: predicated region fallthrough
CT: control target
= control target key end

     0   :  { %8 = vsyncpa [#allocation4], 0  ;;  %s846_s0 = inlined_call_operand.hbm [shape: f32[2,2048], index: 0, kind: input, shape index: {}]   ;;  %s847_s1 = inlined_call_operand.hbm [shape: f32[2048,128], index: 1, kind: input, shape index: {}]   ;;  %s848_s2 = inlined_call_operand.vmem [shape: f32[1,128], index: 2, kind: input, shape index: {}]   ;;  %s849_s3 = inlined_call_operand.hbm [shape: f32[2,128], index: 3, kind: output, shape index: {}]  }
   0x1   :  { %9 = vsyncpa [#allocation7], 0 }
   0x2   :  { %10 = vsyncpa [#allocation5], 0  ;;  %s16_s14 = sshll.u32 %s846_s0, 4  ;;  %s787_s15 = smov [#allocation3]   ;;  %s17_s14 = int_to_ptr.hbm [resolvable:$true] %s16_s14 }
   0x3   :  { %s18_s16 = sshll.u32 %s787_s15, 4  ;;  %s26_s19 = sshll.u32 %s847_s1, 4  ;;  %s19_s16 = int_to_ptr.vmem [resolvable:$true] %s18_s16  ;;  %s27_s19 = int_to_ptr.hbm [resolvable:$true] %s26_s19 }
   0x4   :  { %21 = dma.hbm_to_vmem [thread:$0]  %s17_s14, 512, %s19_s16, [#allocation4]  }
   0x5   :  { %s788_s20 = smov [#allocation6]   ;;  %s789_s22 = smov 128  }
   0x6   :  { %s28_s21 = sshll.u32 %s788_s20, 4  ;;  %s790_s23 = smov 8   ;;  %s29_s21 = int_to_ptr.vmem [resolvable:$true] %s28_s21 }
   0x7   :  { %34 = dma.hbm_to_vmem [thread:$0]  %s27_s19, 32768, %s29_s21, [#allocation7], %s789_s22, %s789_s22, %s790_s23  }
   0x8   :  { %781 = dma.done.wait [#allocation4], 512  }
   0x9   :  { %782 = vsyncadd [#allocation4], 4294966784 }
   0xa   :  { %783 = dma.done.wait [#allocation7], 32768  }
   0xb   :  { %784 = vsyncadd [#allocation7], 4294934528  ;;  %v70_v0 = vld [vmem:[#allocation6 + $0x78] sm:$0xff]  ;;  %v69_v2 = vld [vmem:[#allocation6 + $0x70] sm:$0xff]  ;;  %s792_s24 = smov [#allocation8]   ;;  %s691_s28 = sshll.u32 %s849_s3, 4  ;;  %s692_s28 = int_to_ptr.hbm [resolvable:$true] %s691_s28 }
   0xc   :  { %v102_v1 = vld [vmem:[#allocation6 + $0x178] sm:$0xff]  ;;  %352 = vmatpush.msra.mxu0 %v70_v0  ;;  %v101_v4 = vld [vmem:[#allocation6 + $0x170] sm:$0xff]  ;;  %v68_v6 = vld [vmem:[#allocation6 + $0x68] sm:$0xff]  ;;  %s689_s25 = sshll.u32 %s792_s24, 4  ;;  %s690_s25 = int_to_ptr.vmem [resolvable:$true] %s689_s25 }
   0xd   :  { %392 = vmatpush.msra.mxu2 %v102_v1  ;;  %v86_v3 = vld [vmem:[#allocation6 + $0xf8] sm:$0xff]  ;;  %v85_v7 = vld [vmem:[#allocation6 + $0xf0] sm:$0xff]  ;;  %v100_v8 = vld [vmem:[#allocation6 + $0x168] sm:$0xff] }
   0xe   :  { %v118_v5 = vld [vmem:[#allocation6 + $0x1f8] sm:$0xff]  ;;  %372 = vmatpush.msra.mxu1 %v86_v3  ;;  %353 = vmatpush.msra.mxu0 %v69_v2  ;;  %v117_v9 = vld [vmem:[#allocation6 + $0x1f0] sm:$0xff]  ;;  %v84_v10 = vld [vmem:[#allocation6 + $0xe8] sm:$0xff] }
   0xf   :  { %412 = vmatpush.msra.mxu3 %v118_v5  ;;  %393 = vmatpush.msra.mxu2 %v101_v4  ;;  %v67_v11 = vld [vmem:[#allocation6 + $0x60] sm:$0xff]  ;;  %v116_v13 = vld [vmem:[#allocation6 + $0x1e8] sm:$0xff]  ;;  %v66_v16 = vld [vmem:[#allocation6 + $0x58] sm:$0xff] }
  0x10   :  { %373 = vmatpush.msra.mxu1 %v85_v7  ;;  %v99_v12 = vld [vmem:[#allocation6 + $0x160] sm:$0xff]  ;;  %354 = vmatpush.msra.mxu0 %v68_v6  ;;  %v98_v17 = vld [vmem:[#allocation6 + $0x158] sm:$0xff]  ;;  %v65_v20 = vld [vmem:[#allocation6 + $0x50] sm:$0xff] }
  0x11   :  { %413 = vmatpush.msra.mxu3 %v117_v9  ;;  %394 = vmatpush.msra.mxu2 %v100_v8  ;;  %v83_v14 = vld [vmem:[#allocation6 + $0xe0] sm:$0xff]  ;;  %v82_v18 = vld [vmem:[#allocation6 + $0xd8] sm:$0xff]  ;;  %v97_v21 = vld [vmem:[#allocation6 + $0x150] sm:$0xff] }
  0x12   :  { %v115_v15 = vld [vmem:[#allocation6 + $0x1e0] sm:$0xff]  ;;  %374 = vmatpush.msra.mxu1 %v84_v10  ;;  %355 = vmatpush.msra.mxu0 %v67_v11  ;;  %v114_v19 = vld [vmem:[#allocation6 + $0x1d8] sm:$0xff]  ;;  %v81_v22 = vld [vmem:[#allocation6 + $0xd0] sm:$0xff] }
  0x13   :  { %414 = vmatpush.msra.mxu3 %v116_v13  ;;  %395 = vmatpush.msra.mxu2 %v99_v12  ;;  %v113_v23 = vld [vmem:[#allocation6 + $0x1d0] sm:$0xff]  ;;  %v64_v24 = vld [vmem:[#allocation6 + $0x48] sm:$0xff]  ;;  %v63_v28 = vld [vmem:[#allocation6 + $0x40] sm:$0xff] }
  0x14   :  { %375 = vmatpush.msra.mxu1 %v83_v14  ;;  %356 = vmatpush.msra.mxu0 %v66_v16  ;;  %v96_v25 = vld [vmem:[#allocation6 + $0x148] sm:$0xff]  ;;  %v95_v29 = vld [vmem:[#allocation6 + $0x140] sm:$0xff]  ;;  %v62_v32 = vld [vmem:[#allocation6 + $0x38] sm:$0xff] }
  0x15   :  { %415 = vmatpush.msra.mxu3 %v115_v15  ;;  %396 = vmatpush.msra.mxu2 %v98_v17  ;;  %v80_v26 = vld [vmem:[#allocation6 + $0xc8] sm:$0xff]  ;;  %v79_v30 = vld [vmem:[#allocation6 + $0xc0] sm:$0xff]  ;;  %v94_v33 = vld [vmem:[#allocation6 + $0x138] sm:$0xff] }
  0x16   :  { %376 = vmatpush.msra.mxu1 %v82_v18  ;;  %357 = vmatpush.msra.mxu0 %v65_v20  ;;  %v112_v27 = vld [vmem:[#allocation6 + $0x1c8] sm:$0xff]  ;;  %v111_v31 = vld [vmem:[#allocation6 + $0x1c0] sm:$0xff]  ;;  %v78_v34 = vld [vmem:[#allocation6 + $0xb8] sm:$0xff] }
  0x17   :  { %416 = vmatpush.msra.mxu3 %v114_v19  ;;  %397 = vmatpush.msra.mxu2 %v97_v21  ;;  %v110_v35 = vld [vmem:[#allocation6 + $0x1b8] sm:$0xff]  ;;  %v61_v36 = vld [vmem:[#allocation6 + $0x30] sm:$0xff]  ;;  %v60_v40 = vld [vmem:[#allocation6 + $0x28] sm:$0xff] }
  0x18   :  { %377 = vmatpush.msra.mxu1 %v81_v22  ;;  %358 = vmatpush.msra.mxu0 %v64_v24  ;;  %v93_v37 = vld [vmem:[#allocation6 + $0x130] sm:$0xff]  ;;  %v92_v41 = vld [vmem:[#allocation6 + $0x128] sm:$0xff]  ;;  %v59_v44 = vld [vmem:[#allocation6 + $0x20] sm:$0xff] }
  0x19   :  { %417 = vmatpush.msra.mxu3 %v113_v23  ;;  %398 = vmatpush.msra.mxu2 %v96_v25  ;;  %v77_v38 = vld [vmem:[#allocation6 + $0xb0] sm:$0xff]  ;;  %v76_v42 = vld [vmem:[#allocation6 + $0xa8] sm:$0xff]  ;;  %v91_v45 = vld [vmem:[#allocation6 + $0x120] sm:$0xff] }
  0x1a   :  { %378 = vmatpush.msra.mxu1 %v80_v26  ;;  %359 = vmatpush.msra.mxu0 %v63_v28  ;;  %v109_v39 = vld [vmem:[#allocation6 + $0x1b0] sm:$0xff]  ;;  %v108_v43 = vld [vmem:[#allocation6 + $0x1a8] sm:$0xff]  ;;  %v75_v46 = vld [vmem:[#allocation6 + $0xa0] sm:$0xff] }
  0x1b   :  { %418 = vmatpush.msra.mxu3 %v112_v27  ;;  %399 = vmatpush.msra.mxu2 %v95_v29  ;;  %v107_v47 = vld [vmem:[#allocation6 + $0x1a0] sm:$0xff]  ;;  %v58_v48 = vld [vmem:[#allocation6 + $0x18] sm:$0xff]  ;;  %v57_v52 = vld [vmem:[#allocation6 + $0x10] sm:$0xff] }
  0x1c   :  { %379 = vmatpush.msra.mxu1 %v79_v30  ;;  %360 = vmatpush.msra.mxu0 %v62_v32  ;;  %v90_v49 = vld [vmem:[#allocation6 + $0x118] sm:$0xff]  ;;  %v89_v53 = vld [vmem:[#allocation6 + $0x110] sm:$0xff]  ;;  %v56_v56 = vld [vmem:[#allocation6 + $0x8] sm:$0xff] }
  0x1d   :  { %419 = vmatpush.msra.mxu3 %v111_v31  ;;  %400 = vmatpush.msra.mxu2 %v94_v33  ;;  %v74_v50 = vld [vmem:[#allocation6 + $0x98] sm:$0xff]  ;;  %v73_v54 = vld [vmem:[#allocation6 + $0x90] sm:$0xff]  ;;  %v88_v57 = vld [vmem:[#allocation6 + $0x108] sm:$0xff] }
  0x1e   :  { %380 = vmatpush.msra.mxu1 %v78_v34  ;;  %361 = vmatpush.msra.mxu0 %v61_v36  ;;  %v106_v51 = vld [vmem:[#allocation6 + $0x198] sm:$0xff]  ;;  %v105_v55 = vld [vmem:[#allocation6 + $0x190] sm:$0xff]  ;;  %v72_v58 = vld [vmem:[#allocation6 + $0x88] sm:$0xff] }
  0x1f   :  { %420 = vmatpush.msra.mxu3 %v110_v35  ;;  %401 = vmatpush.msra.mxu2 %v93_v37  ;;  %v104_v59 = vld [vmem:[#allocation6 + $0x188] sm:$0xff]  ;;  %v55_v60 = vld [vmem:[#allocation6] sm:$0xff]  ;;  %v134_v62 = vld [vmem:[#allocation6 + $0x278] sm:$0xff] }
  0x20   :  { %381 = vmatpush.msra.mxu1 %v77_v38  ;;  %362 = vmatpush.msra.mxu0 %v60_v40  ;;  %v87_v61 = vld [vmem:[#allocation6 + $0x100] sm:$0xff]  ;;  %v166_v63 = vld [vmem:[#allocation6 + $0x378] sm:$0xff]  ;;  %v133_v2 = vld [vmem:[#allocation6 + $0x270] sm:$0xff] }
  0x21   :  { %421 = vmatpush.msra.mxu3 %v109_v39  ;;  %402 = vmatpush.msra.mxu2 %v92_v41  ;;  %v71_v0 = vld [vmem:[#allocation6 + $0x80] sm:$0xff]  ;;  %v150_v3 = vld [vmem:[#allocation6 + $0x2f8] sm:$0xff]  ;;  %v165_v4 = vld [vmem:[#allocation6 + $0x370] sm:$0xff] }
  0x22   :  { %382 = vmatpush.msra.mxu1 %v76_v42  ;;  %363 = vmatpush.msra.mxu0 %v59_v44  ;;  %v103_v1 = vld [vmem:[#allocation6 + $0x180] sm:$0xff]  ;;  %v182_v5 = vld [vmem:[#allocation6 + $0x3f8] sm:$0xff]  ;;  %v132_v6 = vld [vmem:[#allocation6 + $0x268] sm:$0xff] }
  0x23   :  { %422 = vmatpush.msra.mxu3 %v108_v43  ;;  %403 = vmatpush.msra.mxu2 %v91_v45  ;;  %v149_v7 = vld [vmem:[#allocation6 + $0x2f0] sm:$0xff]  ;;  %v164_v8 = vld [vmem:[#allocation6 + $0x368] sm:$0xff]  ;;  %v131_v10 = vld [vmem:[#allocation6 + $0x260] sm:$0xff] }
  0x24   :  { %383 = vmatpush.msra.mxu1 %v75_v46  ;;  %364 = vmatpush.msra.mxu0 %v58_v48  ;;  %v181_v9 = vld [vmem:[#allocation6 + $0x3f0] sm:$0xff]  ;;  %v148_v11 = vld [vmem:[#allocation6 + $0x2e8] sm:$0xff]  ;;  %v163_v12 = vld [vmem:[#allocation6 + $0x360] sm:$0xff] }
  0x25   :  { %423 = vmatpush.msra.mxu3 %v107_v47  ;;  %404 = vmatpush.msra.mxu2 %v90_v49  ;;  %v180_v13 = vld [vmem:[#allocation6 + $0x3e8] sm:$0xff]  ;;  %v130_v14 = vld [vmem:[#allocation6 + $0x258] sm:$0xff]  ;;  %v147_v15 = vld [vmem:[#allocation6 + $0x2e0] sm:$0xff] }
  0x26   :  { %384 = vmatpush.msra.mxu1 %v74_v50  ;;  %365 = vmatpush.msra.mxu0 %v57_v52  ;;  %v162_v16 = vld [vmem:[#allocation6 + $0x358] sm:$0xff]  ;;  %v179_v17 = vld [vmem:[#allocation6 + $0x3e0] sm:$0xff]  ;;  %v129_v18 = vld [vmem:[#allocation6 + $0x250] sm:$0xff] }
  0x27   :  { %424 = vmatpush.msra.mxu3 %v106_v51  ;;  %405 = vmatpush.msra.mxu2 %v89_v53  ;;  %v146_v19 = vld [vmem:[#allocation6 + $0x2d8] sm:$0xff]  ;;  %v161_v20 = vld [vmem:[#allocation6 + $0x350] sm:$0xff]  ;;  %v51_v22 = vld [vmem:[#allocation3] sm:$0xff] }
  0x28   :  { %385 = vmatpush.msra.mxu1 %v73_v54  ;;  %366 = vmatpush.msra.mxu0 %v56_v56  ;;  %v178_v21 = vld [vmem:[#allocation6 + $0x3d8] sm:$0xff]  ;;  %v128_v23 = vld [vmem:[#allocation6 + $0x248] sm:$0xff]  ;;  %v145_v24 = vld [vmem:[#allocation6 + $0x2d0] sm:$0xff]  ;;  %315 = vst [vmem:[#allocation1] ss:$4 sm:$0xff] %v51_v22 }
  0x29   :  { %425 = vmatpush.msra.mxu3 %v105_v55  ;;  %406 = vmatpush.msra.mxu2 %v88_v57  ;;  %v160_v25 = vld [vmem:[#allocation6 + $0x348] sm:$0xff]  ;;  %v177_v26 = vld [vmem:[#allocation6 + $0x3d0] sm:$0xff]  ;;  %v127_v27 = vld [vmem:[#allocation6 + $0x240] sm:$0xff] }
  0x2a   :  { %386 = vmatpush.msra.mxu1 %v72_v58  ;;  %367 = vmatpush.msra.mxu0 %v55_v60  ;;  %v144_v28 = vld [vmem:[#allocation6 + $0x2c8] sm:$0xff]  ;;  %v159_v29 = vld [vmem:[#allocation6 + $0x340] sm:$0xff]  ;;  %v126_v31 = vld [vmem:[#allocation6 + $0x238] sm:$0xff] }
  0x2b   :  { %426 = vmatpush.msra.mxu3 %v104_v59  ;;  %407 = vmatpush.msra.mxu2 %v87_v61  ;;  %v176_v30 = vld [vmem:[#allocation6 + $0x3c8] sm:$0xff]  ;;  %v143_v32 = vld [vmem:[#allocation6 + $0x2c0] sm:$0xff]  ;;  %v158_v33 = vld [vmem:[#allocation6 + $0x338] sm:$0xff] }
  0x2c   :  { %432 = vmatpush.msrb.mxu0 %v134_v62  ;;  %387 = vmatpush.msra.mxu1 %v71_v0  ;;  %v175_v34 = vld [vmem:[#allocation6 + $0x3c0] sm:$0xff]  ;;  %v125_v35 = vld [vmem:[#allocation6 + $0x230] sm:$0xff]  ;;  %v142_v36 = vld [vmem:[#allocation6 + $0x2b8] sm:$0xff] }
  0x2d   :  { %472 = vmatpush.msrb.mxu2 %v166_v63  ;;  %427 = vmatpush.msra.mxu3 %v103_v1  ;;  %v157_v37 = vld [vmem:[#allocation6 + $0x330] sm:$0xff]  ;;  %v174_v38 = vld [vmem:[#allocation6 + $0x3b8] sm:$0xff]  ;;  %v52_v39 = vld [vmem:[#allocation3 + $0x8] sm:$0xff] }
  0x2e   :  { %433 = vmatpush.msrb.mxu0 %v133_v2  ;;  %452 = vmatpush.msrb.mxu1 %v150_v3  ;;  %v124_v40 = vld [vmem:[#allocation6 + $0x228] sm:$0xff]  ;;  %v141_v41 = vld [vmem:[#allocation6 + $0x2b0] sm:$0xff]  ;;  %317 = vst [vmem:[#allocation1 + $0x20] ss:$4 sm:$0xff] %v52_v39  ;;  %v123_v49 = vld [vmem:[#allocation6 + $0x220] sm:$0xff] }
  0x2f   :  { %473 = vmatpush.msrb.mxu2 %v165_v4  ;;  %492 = vmatpush.msrb.mxu3 %v182_v5  ;;  %v53_v42 = vld [vmem:[#allocation3 + $0x10] sm:$0xff]  ;;  %v156_v43 = vld [vmem:[#allocation6 + $0x328] sm:$0xff]  ;;  %v823_v47 = vld.sshfl [vmem:[#allocation1 + $0x8] sm:$0xff pattern:$0x73625140] }
  0x30   :  { %434 = vmatpush.msrb.mxu0 %v132_v6  ;;  %453 = vmatpush.msrb.mxu1 %v149_v7  ;;  %v320_v44 = vld.sshfl [vmem:[#allocation1 + $0x10] sm:$0xff pattern:$0x73625140]  ;;  %v819_v45 = vld.sshfl [vmem:[#allocation1] sm:$0xff pattern:$0x73625140] }
  0x31   :  { %474 = vmatpush.msrb.mxu2 %v164_v8  ;;  %493 = vmatpush.msrb.mxu3 %v181_v9  ;;  %v821_v46 = vld.sshfl [vmem:[#allocation1 + $0x18] sm:$0xff pattern:$0x73625140]  ;;  %v155_v51 = vld [vmem:[#allocation6 + $0x320] sm:$0xff]  ;;  %v122_v53 = vld [vmem:[#allocation6 + $0x218] sm:$0xff] }
  0x32   :  { %435 = vmatpush.msrb.mxu0 %v131_v10  ;;  %454 = vmatpush.msrb.mxu1 %v148_v11  ;;  %v173_v48 = vld [vmem:[#allocation6 + $0x3b0] sm:$0xff]  ;;  %v140_v50 = vld [vmem:[#allocation6 + $0x2a8] sm:$0xff]  ;;  %326 = vst [vmem:[#allocation1] ss:$4 sm:$0xff] %v53_v42  ;;  %v139_v54 = vld [vmem:[#allocation6 + $0x2a0] sm:$0xff] }
  0x33   :  { %475 = vmatpush.msrb.mxu2 %v163_v12  ;;  %494 = vmatpush.msrb.mxu3 %v180_v13  ;;  %v172_v52 = vld [vmem:[#allocation6 + $0x3a8] sm:$0xff]  ;;  %v154_v55 = vld [vmem:[#allocation6 + $0x318] sm:$0xff]  ;;  %v171_v56 = vld [vmem:[#allocation6 + $0x3a0] sm:$0xff] }
  0x34   :  { %436 = vmatpush.msrb.mxu0 %v130_v14  ;;  %455 = vmatpush.msrb.mxu1 %v147_v15  ;;  %v121_v57 = vld [vmem:[#allocation6 + $0x210] sm:$0xff]  ;;  %v138_v58 = vld [vmem:[#allocation6 + $0x298] sm:$0xff]  ;;  %v120_v2 = vld [vmem:[#allocation6 + $0x208] sm:$0xff] }
  0x35   :  { %476 = vmatpush.msrb.mxu2 %v162_v16  ;;  %495 = vmatpush.msrb.mxu3 %v179_v17  ;;  %v54_v59 = vld [vmem:[#allocation3 + $0x18] sm:$0xff]  ;;  %v825_v60 = vld.sshfl [vmem:[#allocation1 + $0x30] sm:$0xff pattern:$0x73625140]  ;;  %v153_v0 = vld [vmem:[#allocation6 + $0x310] sm:$0xff] }
  0x36   :  { %437 = vmatpush.msrb.mxu0 %v129_v18  ;;  %456 = vmatpush.msrb.mxu1 %v146_v19  ;;  %v827_v61 = vld.sshfl [vmem:[#allocation1 + $0x20] sm:$0xff pattern:$0x73625140]  ;;  %v829_v62 = vld.sshfl [vmem:[#allocation1 + $0x38] sm:$0xff pattern:$0x73625140] }
  0x37   :  { %477 = vmatpush.msrb.mxu2 %v161_v20  ;;  %496 = vmatpush.msrb.mxu3 %v178_v21  ;;  %v831_v63 = vld.sshfl [vmem:[#allocation1 + $0x28] sm:$0xff pattern:$0x73625140]  ;;  %v137_v3 = vld [vmem:[#allocation6 + $0x290] sm:$0xff]  ;;  %v152_v4 = vld [vmem:[#allocation6 + $0x308] sm:$0xff] }
  0x38   :  { %438 = vmatpush.msrb.mxu0 %v128_v23  ;;  %457 = vmatpush.msrb.mxu1 %v145_v24  ;;  %v170_v1 = vld [vmem:[#allocation6 + $0x398] sm:$0xff]  ;;  %327 = vst [vmem:[#allocation1 + $0x20] ss:$4 sm:$0xff] %v54_v59  ;;  %v169_v5 = vld [vmem:[#allocation6 + $0x390] sm:$0xff]  ;;  %v119_v6 = vld [vmem:[#allocation6 + $0x200] sm:$0xff] }
  0x39   :  { %478 = vmatpush.msrb.mxu2 %v160_v25  ;;  %497 = vmatpush.msrb.mxu3 %v177_v26  ;;  %v136_v7 = vld [vmem:[#allocation6 + $0x288] sm:$0xff]  ;;  %v151_v8 = vld [vmem:[#allocation6 + $0x300] sm:$0xff]  ;;  %v198_v10 = vld [vmem:[#allocation6 + $0x478] sm:$0xff] }
  0x3a   :  { %439 = vmatpush.msrb.mxu0 %v127_v27  ;;  %458 = vmatpush.msrb.mxu1 %v144_v28  ;;  %v168_v9 = vld [vmem:[#allocation6 + $0x388] sm:$0xff]  ;;  %v230_v11 = vld [vmem:[#allocation6 + $0x578] sm:$0xff]  ;;  %v135_v12 = vld [vmem:[#allocation6 + $0x280] sm:$0xff] }
  0x3b   :  { %479 = vmatpush.msrb.mxu2 %v159_v29  ;;  %498 = vmatpush.msrb.mxu3 %v176_v30  ;;  %v167_v13 = vld [vmem:[#allocation6 + $0x380] sm:$0xff]  ;;  %v197_v14 = vld [vmem:[#allocation6 + $0x470] sm:$0xff]  ;;  %v214_v15 = vld [vmem:[#allocation6 + $0x4f8] sm:$0xff] }
  0x3c   :  { %440 = vmatpush.msrb.mxu0 %v126_v31  ;;  %459 = vmatpush.msrb.mxu1 %v143_v32  ;;  %v229_v16 = vld [vmem:[#allocation6 + $0x570] sm:$0xff]  ;;  %v246_v17 = vld [vmem:[#allocation6 + $0x5f8] sm:$0xff]  ;;  %v196_v18 = vld [vmem:[#allocation6 + $0x468] sm:$0xff] }
  0x3d   :  { %480 = vmatpush.msrb.mxu2 %v158_v33  ;;  %499 = vmatpush.msrb.mxu3 %v175_v34  ;;  %v213_v19 = vld [vmem:[#allocation6 + $0x4f0] sm:$0xff]  ;;  %v228_v20 = vld [vmem:[#allocation6 + $0x568] sm:$0xff]  ;;  %v195_v22 = vld [vmem:[#allocation6 + $0x460] sm:$0xff] }
  0x3e   :  { %441 = vmatpush.msrb.mxu0 %v125_v35  ;;  %460 = vmatpush.msrb.mxu1 %v142_v36  ;;  %v245_v21 = vld [vmem:[#allocation6 + $0x5f0] sm:$0xff]  ;;  %v212_v23 = vld [vmem:[#allocation6 + $0x4e8] sm:$0xff]  ;;  %v227_v24 = vld [vmem:[#allocation6 + $0x560] sm:$0xff] }
  0x3f   :  { %481 = vmatpush.msrb.mxu2 %v157_v37  ;;  %500 = vmatpush.msrb.mxu3 %v174_v38  ;;  %v244_v25 = vld [vmem:[#allocation6 + $0x5e8] sm:$0xff]  ;;  %v194_v26 = vld [vmem:[#allocation6 + $0x458] sm:$0xff]  ;;  %v211_v27 = vld [vmem:[#allocation6 + $0x4e0] sm:$0xff] }
  0x40   :  { %442 = vmatpush.msrb.mxu0 %v124_v40  ;;  %461 = vmatpush.msrb.mxu1 %v141_v41  ;;  %v226_v28 = vld [vmem:[#allocation6 + $0x558] sm:$0xff]  ;;  %v243_v29 = vld [vmem:[#allocation6 + $0x5e0] sm:$0xff]  ;;  %v193_v30 = vld [vmem:[#allocation6 + $0x450] sm:$0xff] }
  0x41   :  { %482 = vmatpush.msrb.mxu2 %v156_v43  ;;  %501 = vmatpush.msrb.mxu3 %v173_v48  ;;  %v210_v31 = vld [vmem:[#allocation6 + $0x4d8] sm:$0xff]  ;;  %v225_v32 = vld [vmem:[#allocation6 + $0x550] sm:$0xff]  ;;  %v192_v34 = vld [vmem:[#allocation6 + $0x448] sm:$0xff] }
  0x42   :  { %443 = vmatpush.msrb.mxu0 %v123_v49  ;;  %462 = vmatpush.msrb.mxu1 %v140_v50  ;;  %v242_v33 = vld [vmem:[#allocation6 + $0x5d8] sm:$0xff]  ;;  %v209_v35 = vld [vmem:[#allocation6 + $0x4d0] sm:$0xff]  ;;  %v224_v36 = vld [vmem:[#allocation6 + $0x548] sm:$0xff] }
  0x43   :  { %483 = vmatpush.msrb.mxu2 %v155_v51  ;;  %502 = vmatpush.msrb.mxu3 %v172_v52  ;;  %v241_v37 = vld [vmem:[#allocation6 + $0x5d0] sm:$0xff]  ;;  %v191_v38 = vld [vmem:[#allocation6 + $0x440] sm:$0xff]  ;;  %v208_v39 = vld [vmem:[#allocation6 + $0x4c8] sm:$0xff] }
  0x44   :  { %444 = vmatpush.msrb.mxu0 %v122_v53  ;;  %463 = vmatpush.msrb.mxu1 %v139_v54  ;;  %v223_v40 = vld [vmem:[#allocation6 + $0x540] sm:$0xff]  ;;  %v240_v41 = vld [vmem:[#allocation6 + $0x5c8] sm:$0xff]  ;;  %v190_v42 = vld [vmem:[#allocation6 + $0x438] sm:$0xff] }
  0x45   :  { %484 = vmatpush.msrb.mxu2 %v154_v55  ;;  %503 = vmatpush.msrb.mxu3 %v171_v56  ;;  %v207_v43 = vld [vmem:[#allocation6 + $0x4c0] sm:$0xff]  ;;  %v221_v48 = vld [vmem:[#allocation6 + $0x530] sm:$0xff]  ;;  %v238_v49 = vld [vmem:[#allocation6 + $0x5b8] sm:$0xff] }
  0x46   :  { %445 = vmatpush.msrb.mxu0 %v121_v57  ;;  %464 = vmatpush.msrb.mxu1 %v138_v58  ;;  %v188_v50 = vld [vmem:[#allocation6 + $0x428] sm:$0xff]  ;;  %v205_v51 = vld [vmem:[#allocation6 + $0x4b0] sm:$0xff]  ;;  %v187_v54 = vld [vmem:[#allocation6 + $0x420] sm:$0xff] }
  0x47   :  { %485 = vmatpush.msrb.mxu2 %v153_v0  ;;  %504 = vmatpush.msrb.mxu3 %v170_v1  ;;  %v220_v52 = vld [vmem:[#allocation6 + $0x528] sm:$0xff]  ;;  %v237_v53 = vld [vmem:[#allocation6 + $0x5b0] sm:$0xff]  ;;  %v219_v56 = vld [vmem:[#allocation6 + $0x520] sm:$0xff] }
  0x48   :  { %446 = vmatpush.msrb.mxu0 %v120_v2  ;;  %465 = vmatpush.msrb.mxu1 %v137_v3  ;;  %v204_v55 = vld [vmem:[#allocation6 + $0x4a8] sm:$0xff]  ;;  %v186_v58 = vld [vmem:[#allocation6 + $0x418] sm:$0xff]  ;;  %v203_v59 = vld [vmem:[#allocation6 + $0x4a0] sm:$0xff] }
  0x49   :  { %486 = vmatpush.msrb.mxu2 %v152_v4  ;;  %505 = vmatpush.msrb.mxu3 %v169_v5  ;;  %v236_v57 = vld [vmem:[#allocation6 + $0x5a8] sm:$0xff]  ;;  %v217_v0 = vld [vmem:[#allocation6 + $0x510] sm:$0xff]  ;;  %v234_v1 = vld [vmem:[#allocation6 + $0x598] sm:$0xff] }
  0x4a   :  { %408 = vmatmul.f32.vlgmr.msra.gmra.mxu2 %v320_v44  ;;  %447 = vmatpush.msrb.mxu0 %v119_v6  ;;  %v222_v44 = vld [vmem:[#allocation6 + $0x538] sm:$0xff]  ;;  %v184_v2 = vld [vmem:[#allocation6 + $0x408] sm:$0xff]  ;;  %v201_v3 = vld [vmem:[#allocation6 + $0x490] sm:$0xff] }
  0x4b   :  { %466 = vmatpush.msrb.mxu1 %v136_v7  ;;  %487 = vmatpush.msrb.mxu2 %v151_v8  ;;  %v216_v4 = vld [vmem:[#allocation6 + $0x508] sm:$0xff]  ;;  %v233_v5 = vld [vmem:[#allocation6 + $0x590] sm:$0xff]  ;;  %v183_v6 = vld [vmem:[#allocation6 + $0x400] sm:$0xff] }
  0x4c   :  { %506 = vmatpush.msrb.mxu3 %v168_v9  ;;  %368 = vmatmul.f32.vlgmr.msra.gmra.mxu0 %v819_v45  ;;  %v239_v45 = vld [vmem:[#allocation6 + $0x5c0] sm:$0xff]  ;;  %v200_v7 = vld [vmem:[#allocation6 + $0x488] sm:$0xff] }
  0x4d   :  { %428 = vmatmul.f32.vlgmr.msra.gmra.mxu3 %v821_v46  ;;  %512 = vmatpush.msra.mxu0 %v198_v10  ;;  %v189_v46 = vld [vmem:[#allocation6 + $0x430] sm:$0xff]  ;;  %v215_v8 = vld [vmem:[#allocation6 + $0x500] sm:$0xff]  ;;  %v232_v9 = vld [vmem:[#allocation6 + $0x588] sm:$0xff] }
  0x4e   :  { %552 = vmatpush.msra.mxu2 %v230_v11  ;;  %467 = vmatpush.msrb.mxu1 %v135_v12  ;;  %v328_v10 = vld.sshfl [vmem:[#allocation1] sm:$0xff pattern:$0x73625140]  ;;  %v330_v11 = vld.sshfl [vmem:[#allocation1 + $0x10] sm:$0xff pattern:$0x73625140] }
  0x4f   :  { %507 = vmatpush.msrb.mxu3 %v167_v13  ;;  %388 = vmatmul.f32.vlgmr.msra.gmra.mxu1 %v823_v47  ;;  %v206_v47 = vld [vmem:[#allocation6 + $0x4b8] sm:$0xff] }
  0x50   :  { %513 = vmatpush.msra.mxu0 %v197_v14  ;;  %532 = vmatpush.msra.mxu1 %v214_v15  ;;  %v262_v12 = vld [vmem:[#allocation6 + $0x678] sm:$0xff]  ;;  %v199_v14 = vld [vmem:[#allocation6 + $0x480] sm:$0xff] }
  0x51   :  { %553 = vmatpush.msra.mxu2 %v229_v16  ;;  %572 = vmatpush.msra.mxu3 %v246_v17  ;;  %v294_v13 = vld [vmem:[#allocation6 + $0x778] sm:$0xff]  ;;  %v231_v15 = vld [vmem:[#allocation6 + $0x580] sm:$0xff]  ;;  %v331_v17 = vld.sshfl [vmem:[#allocation1 + $0x18] sm:$0xff pattern:$0x73625140] }
  0x52   :  { %514 = vmatpush.msra.mxu0 %v196_v18  ;;  %533 = vmatpush.msra.mxu1 %v213_v19  ;;  %v329_v16 = vld.sshfl [vmem:[#allocation1 + $0x8] sm:$0xff pattern:$0x73625140]  ;;  %v261_v18 = vld [vmem:[#allocation6 + $0x670] sm:$0xff] }
  0x53   :  { %554 = vmatpush.msra.mxu2 %v228_v20  ;;  %573 = vmatpush.msra.mxu3 %v245_v21  ;;  %v278_v19 = vld [vmem:[#allocation6 + $0x6f8] sm:$0xff]  ;;  %v293_v20 = vld [vmem:[#allocation6 + $0x770] sm:$0xff] }
  0x54   :  { %488 = vmatmul.f32.vlgmr.msrb.gmra.mxu2 %v825_v60  ;;  %515 = vmatpush.msra.mxu0 %v195_v22  ;;  %v218_v60 = vld [vmem:[#allocation6 + $0x518] sm:$0xff]  ;;  %v260_v22 = vld [vmem:[#allocation6 + $0x668] sm:$0xff] }
  0x55   :  { %534 = vmatpush.msra.mxu1 %v212_v23  ;;  %555 = vmatpush.msra.mxu2 %v227_v24  ;;  %v310_v21 = vld [vmem:[#allocation6 + $0x7f8] sm:$0xff]  ;;  %v277_v23 = vld [vmem:[#allocation6 + $0x6f0] sm:$0xff]  ;;  %v292_v24 = vld [vmem:[#allocation6 + $0x768] sm:$0xff] }
  0x56   :  { %574 = vmatpush.msra.mxu3 %v244_v25  ;;  %448 = vmatmul.f32.vlgmr.msrb.gmra.mxu0 %v827_v61  ;;  %v235_v61 = vld [vmem:[#allocation6 + $0x5a0] sm:$0xff]  ;;  %v309_v25 = vld [vmem:[#allocation6 + $0x7f0] sm:$0xff] }
  0x57   :  { %508 = vmatmul.f32.vlgmr.msrb.gmra.mxu3 %v829_v62  ;;  %516 = vmatpush.msra.mxu0 %v194_v26  ;;  %v185_v62 = vld [vmem:[#allocation6 + $0x410] sm:$0xff]  ;;  %v259_v26 = vld [vmem:[#allocation6 + $0x660] sm:$0xff] }
  0x58   :  { %535 = vmatpush.msra.mxu1 %v211_v27  ;;  %556 = vmatpush.msra.mxu2 %v226_v28  ;;  %v276_v27 = vld [vmem:[#allocation6 + $0x6e8] sm:$0xff]  ;;  %v291_v28 = vld [vmem:[#allocation6 + $0x760] sm:$0xff] }
  0x59   :  { %575 = vmatpush.msra.mxu3 %v243_v29  ;;  %468 = vmatmul.f32.vlgmr.msrb.gmra.mxu1 %v831_v63  ;;  %v202_v63 = vld [vmem:[#allocation6 + $0x498] sm:$0xff]  ;;  %v308_v29 = vld [vmem:[#allocation6 + $0x7e8] sm:$0xff] }
  0x5a   :  { %517 = vmatpush.msra.mxu0 %v193_v30  ;;  %536 = vmatpush.msra.mxu1 %v210_v31  ;;  %v258_v30 = vld [vmem:[#allocation6 + $0x658] sm:$0xff]  ;;  %v275_v31 = vld [vmem:[#allocation6 + $0x6e0] sm:$0xff] }
  0x5b   :  { %557 = vmatpush.msra.mxu2 %v225_v32  ;;  %576 = vmatpush.msra.mxu3 %v242_v33  ;;  %v290_v32 = vld [vmem:[#allocation6 + $0x758] sm:$0xff]  ;;  %v307_v33 = vld [vmem:[#allocation6 + $0x7e0] sm:$0xff] }
  0x5c   :  { %518 = vmatpush.msra.mxu0 %v192_v34  ;;  %537 = vmatpush.msra.mxu1 %v209_v35  ;;  %v257_v34 = vld [vmem:[#allocation6 + $0x650] sm:$0xff]  ;;  %v274_v35 = vld [vmem:[#allocation6 + $0x6d8] sm:$0xff] }
  0x5d   :  { %558 = vmatpush.msra.mxu2 %v224_v36  ;;  %577 = vmatpush.msra.mxu3 %v241_v37  ;;  %v289_v36 = vld [vmem:[#allocation6 + $0x750] sm:$0xff]  ;;  %v306_v37 = vld [vmem:[#allocation6 + $0x7d8] sm:$0xff] }
  0x5e   :  { %519 = vmatpush.msra.mxu0 %v191_v38  ;;  %538 = vmatpush.msra.mxu1 %v208_v39  ;;  %v256_v38 = vld [vmem:[#allocation6 + $0x648] sm:$0xff]  ;;  %v273_v39 = vld [vmem:[#allocation6 + $0x6d0] sm:$0xff] }
  0x5f   :  { %559 = vmatpush.msra.mxu2 %v223_v40  ;;  %578 = vmatpush.msra.mxu3 %v240_v41  ;;  %v288_v40 = vld [vmem:[#allocation6 + $0x748] sm:$0xff]  ;;  %v305_v41 = vld [vmem:[#allocation6 + $0x7d0] sm:$0xff] }
  0x60   :  { %520 = vmatpush.msra.mxu0 %v190_v42  ;;  %539 = vmatpush.msra.mxu1 %v207_v43  ;;  %v255_v42 = vld [vmem:[#allocation6 + $0x640] sm:$0xff]  ;;  %v272_v43 = vld [vmem:[#allocation6 + $0x6c8] sm:$0xff] }
  0x61   :  { %560 = vmatpush.msra.mxu2 %v222_v44  ;;  %579 = vmatpush.msra.mxu3 %v239_v45  ;;  %v287_v44 = vld [vmem:[#allocation6 + $0x740] sm:$0xff]  ;;  %v304_v45 = vld [vmem:[#allocation6 + $0x7c8] sm:$0xff] }
  0x62   :  { %521 = vmatpush.msra.mxu0 %v189_v46  ;;  %540 = vmatpush.msra.mxu1 %v206_v47  ;;  %v254_v46 = vld [vmem:[#allocation6 + $0x638] sm:$0xff]  ;;  %v271_v47 = vld [vmem:[#allocation6 + $0x6c0] sm:$0xff] }
  0x63   :  { %561 = vmatpush.msra.mxu2 %v221_v48  ;;  %580 = vmatpush.msra.mxu3 %v238_v49  ;;  %v286_v48 = vld [vmem:[#allocation6 + $0x738] sm:$0xff]  ;;  %v303_v49 = vld [vmem:[#allocation6 + $0x7c0] sm:$0xff] }
  0x64   :  { %522 = vmatpush.msra.mxu0 %v188_v50  ;;  %541 = vmatpush.msra.mxu1 %v205_v51  ;;  %v253_v50 = vld [vmem:[#allocation6 + $0x630] sm:$0xff]  ;;  %v270_v51 = vld [vmem:[#allocation6 + $0x6b8] sm:$0xff] }
  0x65   :  { %562 = vmatpush.msra.mxu2 %v220_v52  ;;  %581 = vmatpush.msra.mxu3 %v237_v53  ;;  %v285_v52 = vld [vmem:[#allocation6 + $0x730] sm:$0xff]  ;;  %v302_v53 = vld [vmem:[#allocation6 + $0x7b8] sm:$0xff] }
  0x66   :  { %523 = vmatpush.msra.mxu0 %v187_v54  ;;  %542 = vmatpush.msra.mxu1 %v204_v55  ;;  %v252_v54 = vld [vmem:[#allocation6 + $0x628] sm:$0xff]  ;;  %v269_v55 = vld [vmem:[#allocation6 + $0x6b0] sm:$0xff] }
  0x67   :  { %563 = vmatpush.msra.mxu2 %v219_v56  ;;  %582 = vmatpush.msra.mxu3 %v236_v57  ;;  %v284_v56 = vld [vmem:[#allocation6 + $0x728] sm:$0xff]  ;;  %v301_v57 = vld [vmem:[#allocation6 + $0x7b0] sm:$0xff] }
  0x68   :  { %524 = vmatpush.msra.mxu0 %v186_v58  ;;  %543 = vmatpush.msra.mxu1 %v203_v59  ;;  %v251_v58 = vld [vmem:[#allocation6 + $0x620] sm:$0xff]  ;;  %v268_v59 = vld [vmem:[#allocation6 + $0x6a8] sm:$0xff] }
  0x69   :  { %564 = vmatpush.msra.mxu2 %v218_v60  ;;  %583 = vmatpush.msra.mxu3 %v235_v61  ;;  %v283_v60 = vld [vmem:[#allocation6 + $0x720] sm:$0xff]  ;;  %v300_v61 = vld [vmem:[#allocation6 + $0x7a8] sm:$0xff] }
  0x6a   :  { %525 = vmatpush.msra.mxu0 %v185_v62  ;;  %544 = vmatpush.msra.mxu1 %v202_v63  ;;  %v250_v62 = vld [vmem:[#allocation6 + $0x618] sm:$0xff]  ;;  %v267_v63 = vld [vmem:[#allocation6 + $0x6a0] sm:$0xff] }
  0x6b   :  { %565 = vmatpush.msra.mxu2 %v217_v0  ;;  %584 = vmatpush.msra.mxu3 %v234_v1  ;;  %v282_v0 = vld [vmem:[#allocation6 + $0x718] sm:$0xff]  ;;  %v299_v1 = vld [vmem:[#allocation6 + $0x7a0] sm:$0xff] }
  0x6c   :  { %526 = vmatpush.msra.mxu0 %v184_v2  ;;  %545 = vmatpush.msra.mxu1 %v201_v3  ;;  %v249_v2 = vld [vmem:[#allocation6 + $0x610] sm:$0xff]  ;;  %v266_v3 = vld [vmem:[#allocation6 + $0x698] sm:$0xff] }
  0x6d   :  { %566 = vmatpush.msra.mxu2 %v216_v4  ;;  %585 = vmatpush.msra.mxu3 %v233_v5  ;;  %v281_v4 = vld [vmem:[#allocation6 + $0x710] sm:$0xff]  ;;  %v298_v5 = vld [vmem:[#allocation6 + $0x798] sm:$0xff] }
  0x6e   :  { %527 = vmatpush.msra.mxu0 %v183_v6  ;;  %546 = vmatpush.msra.mxu1 %v200_v7  ;;  %v248_v6 = vld [vmem:[#allocation6 + $0x608] sm:$0xff]  ;;  %v265_v7 = vld [vmem:[#allocation6 + $0x690] sm:$0xff] }
  0x6f   :  { %567 = vmatpush.msra.mxu2 %v215_v8  ;;  %586 = vmatpush.msra.mxu3 %v232_v9  ;;  %v280_v8 = vld [vmem:[#allocation6 + $0x708] sm:$0xff]  ;;  %v297_v9 = vld [vmem:[#allocation6 + $0x790] sm:$0xff] }
  0x70   :  { %528 = vmatmul.f32.vlgmr.msra.gmra.mxu0 %v328_v10  ;;  %568 = vmatmul.f32.vlgmr.msra.gmra.mxu2 %v330_v11  ;;  %v247_v10 = vld [vmem:[#allocation6 + $0x600] sm:$0xff]  ;;  %v264_v11 = vld [vmem:[#allocation6 + $0x688] sm:$0xff] }
  0x71   :  { %592 = vmatpush.msrb.mxu0 %v262_v12  ;;  %632 = vmatpush.msrb.mxu2 %v294_v13  ;;  %v279_v12 = vld [vmem:[#allocation6 + $0x700] sm:$0xff]  ;;  %v296_v13 = vld [vmem:[#allocation6 + $0x788] sm:$0xff] }
  0x72   :  { %547 = vmatpush.msra.mxu1 %v199_v14  ;;  %587 = vmatpush.msra.mxu3 %v231_v15  ;;  %v332_v14 = vld.sshfl [vmem:[#allocation1 + $0x20] sm:$0xff pattern:$0x73625140]  ;;  %v334_v15 = vld.sshfl [vmem:[#allocation1 + $0x30] sm:$0xff pattern:$0x73625140] }
  0x73   :  { %548 = vmatmul.f32.vlgmr.msra.gmra.mxu1 %v329_v16  ;;  %588 = vmatmul.f32.vlgmr.msra.gmra.mxu3 %v331_v17  ;;  %v263_v16 = vld [vmem:[#allocation6 + $0x680] sm:$0xff] }
  0x74   :  { %593 = vmatpush.msrb.mxu0 %v261_v18  ;;  %612 = vmatpush.msrb.mxu1 %v278_v19  ;;  %v295_v17 = vld [vmem:[#allocation6 + $0x780] sm:$0xff]  ;;  %v335_v19 = vld.sshfl [vmem:[#allocation1 + $0x38] sm:$0xff pattern:$0x73625140] }
  0x75   :  { %633 = vmatpush.msrb.mxu2 %v293_v20  ;;  %652 = vmatpush.msrb.mxu3 %v310_v21  ;;  %v333_v18 = vld.sshfl [vmem:[#allocation1 + $0x28] sm:$0xff pattern:$0x73625140] }
  0x76   :  { %594 = vmatpush.msrb.mxu0 %v260_v22  ;;  %613 = vmatpush.msrb.mxu1 %v277_v23 }
  0x77   :  { %634 = vmatpush.msrb.mxu2 %v292_v24  ;;  %653 = vmatpush.msrb.mxu3 %v309_v25 }
  0x78   :  { %595 = vmatpush.msrb.mxu0 %v259_v26  ;;  %614 = vmatpush.msrb.mxu1 %v276_v27  ;;  %v791_v27 = vmov 0.0  }
  0x79   :  { %635 = vmatpush.msrb.mxu2 %v291_v28  ;;  %654 = vmatpush.msrb.mxu3 %v308_v29  ;;  %49 = vst [vmem:[#allocation2] sm:$0x3] %v791_v27 }
  0x7a   :  { %596 = vmatpush.msrb.mxu0 %v258_v30  ;;  %615 = vmatpush.msrb.mxu1 %v275_v31 }
  0x7b   :  { %636 = vmatpush.msrb.mxu2 %v290_v32  ;;  %655 = vmatpush.msrb.mxu3 %v307_v33 }
  0x7c   :  { %597 = vmatpush.msrb.mxu0 %v257_v34  ;;  %616 = vmatpush.msrb.mxu1 %v274_v35 }
  0x7d   :  { %637 = vmatpush.msrb.mxu2 %v289_v36  ;;  %656 = vmatpush.msrb.mxu3 %v306_v37 }
  0x7e   :  { %598 = vmatpush.msrb.mxu0 %v256_v38  ;;  %617 = vmatpush.msrb.mxu1 %v273_v39 }
  0x7f   :  { %638 = vmatpush.msrb.mxu2 %v288_v40  ;;  %657 = vmatpush.msrb.mxu3 %v305_v41 }
  0x80   :  { %599 = vmatpush.msrb.mxu0 %v255_v42  ;;  %618 = vmatpush.msrb.mxu1 %v272_v43 }
  0x81   :  { %639 = vmatpush.msrb.mxu2 %v287_v44  ;;  %658 = vmatpush.msrb.mxu3 %v304_v45 }
  0x82   :  { %600 = vmatpush.msrb.mxu0 %v254_v46  ;;  %619 = vmatpush.msrb.mxu1 %v271_v47 }
  0x83   :  { %640 = vmatpush.msrb.mxu2 %v286_v48  ;;  %659 = vmatpush.msrb.mxu3 %v303_v49 }
  0x84   :  { %601 = vmatpush.msrb.mxu0 %v253_v50  ;;  %620 = vmatpush.msrb.mxu1 %v270_v51  ;;  %v50_v50 = vld [vmem:[#allocation2] sm:$0x3] }
  0x85   :  { %641 = vmatpush.msrb.mxu2 %v285_v52  ;;  %660 = vmatpush.msrb.mxu3 %v302_v53 }
  0x86   :  { %602 = vmatpush.msrb.mxu0 %v252_v54  ;;  %621 = vmatpush.msrb.mxu1 %v269_v55  ;;  %v708_v54 = vld [vmem:[%s848_s2] ss:$0 sm:$0xff] }
  0x87   :  { %642 = vmatpush.msrb.mxu2 %v284_v56  ;;  %661 = vmatpush.msrb.mxu3 %v301_v57 }
  0x88   :  { %603 = vmatpush.msrb.mxu0 %v251_v58  ;;  %622 = vmatpush.msrb.mxu1 %v268_v59 }
  0x89   :  { %643 = vmatpush.msrb.mxu2 %v283_v60  ;;  %662 = vmatpush.msrb.mxu3 %v300_v61 }
  0x8a   :  { %604 = vmatpush.msrb.mxu0 %v250_v62  ;;  %623 = vmatpush.msrb.mxu1 %v267_v63 }
  0x8b   :  { %644 = vmatpush.msrb.mxu2 %v282_v0  ;;  %663 = vmatpush.msrb.mxu3 %v299_v1 }
  0x8c   :  { %605 = vmatpush.msrb.mxu0 %v249_v2  ;;  %624 = vmatpush.msrb.mxu1 %v266_v3 }
  0x8d   :  { %645 = vmatpush.msrb.mxu2 %v281_v4  ;;  %664 = vmatpush.msrb.mxu3 %v298_v5 }
  0x8e   :  { %606 = vmatpush.msrb.mxu0 %v248_v6  ;;  %625 = vmatpush.msrb.mxu1 %v265_v7 }
  0x8f   :  { %646 = vmatpush.msrb.mxu2 %v280_v8  ;;  %665 = vmatpush.msrb.mxu3 %v297_v9 }
  0x90   :  { %607 = vmatpush.msrb.mxu0 %v247_v10  ;;  %626 = vmatpush.msrb.mxu1 %v264_v11 }
  0x91   :  { %647 = vmatpush.msrb.mxu2 %v279_v12  ;;  %666 = vmatpush.msrb.mxu3 %v296_v13 }
  0x92   :  { %608 = vmatmul.f32.vlgmr.msrb.gmra.mxu0 %v332_v14  ;;  %648 = vmatmul.f32.vlgmr.msrb.gmra.mxu2 %v334_v15 }
  0x93   :  { %627 = vmatpush.msrb.mxu1 %v263_v16  ;;  %667 = vmatpush.msrb.mxu3 %v295_v17 }
  0x94   :  { %628 = vmatmul.f32.vlgmr.msrb.gmra.mxu1 %v333_v18  ;;  %668 = vmatmul.f32.vlgmr.msrb.gmra.mxu3 %v335_v19 }
  0xc9   :  { %v369_v21 = vpop.f32.mrf.mxu0 }
  0xcc   :  { %v389_v20 = vpop.f32.mrf.mxu1 }
  0xcd   :  { %v390_v22 = vadd.f32 %v389_v20, %v369_v21  ;;  %v409_v23 = vpop.f32.mrf.mxu2 }
  0xcf   :  { %v410_v24 = vadd.f32 %v409_v23, %v390_v22 }
  0xd0   :  { %v429_v25 = vpop.f32.mrf.mxu3 }
  0xd1   :  { %v430_v26 = vadd.f32 %v429_v25, %v410_v24 }
  0xd3   :  { %v449_v28 = vpop.f32.mrf.mxu0 }
  0xd4   :  { %v450_v29 = vadd.f32 %v449_v28, %v430_v26 }
  0xd6   :  { %v469_v30 = vpop.f32.mrf.mxu1 }
  0xd7   :  { %v470_v31 = vadd.f32 %v469_v30, %v450_v29  ;;  %v489_v32 = vpop.f32.mrf.mxu2 }
  0xd9   :  { %v490_v33 = vadd.f32 %v489_v32, %v470_v31 }
  0xda   :  { %v509_v34 = vpop.f32.mrf.mxu3 }
  0xdb   :  { %v510_v36 = vadd.f32 %v509_v34, %v490_v33 }
  0xed   :  { %v529_v35 = vpop.f32.mrf.mxu0 }
  0xee   :  { %v530_v37 = vadd.f32 %v529_v35, %v510_v36 }
  0xf0   :  { %v549_v38 = vpop.f32.mrf.mxu1 }
  0xf1   :  { %v550_v40 = vadd.f32 %v549_v38, %v530_v37 }
  0xf3   :  { %v569_v39 = vpop.f32.mrf.mxu2 }
  0xf4   :  { %v570_v41 = vadd.f32 %v569_v39, %v550_v40 }
  0xf6   :  { %v589_v42 = vpop.f32.mrf.mxu3 }
  0xf7   :  { %v590_v43 = vadd.f32 %v589_v42, %v570_v41 }
 0x10f   :  { %v609_v44 = vpop.f32.mrf.mxu0 }
 0x110   :  { %v610_v45 = vadd.f32 %v609_v44, %v590_v43 }
 0x111   :  { %v629_v46 = vpop.f32.mrf.mxu1 }
 0x112   :  { %v630_v47 = vadd.f32 %v629_v46, %v610_v45 }
 0x115   :  { %v649_v48 = vpop.f32.mrf.mxu2 }
 0x116   :  { %v650_v49 = vadd.f32 %v649_v48, %v630_v47 }
 0x117   :  { %v669_v51 = vpop.f32.mrf.mxu3 }
 0x118   :  { %v670_v52 = vadd.f32 %v669_v51, %v650_v49 }
 0x11a   :  { %v672_v53 = vadd.f32 %v670_v52, %v50_v50 }
 0x11c   :  { %673 = vst [vmem:[#allocation2] sm:$0x3] %v672_v53 }
 0x123   :  { %v677_v55 = vld [vmem:[#allocation2] sm:$0x3] }
 0x124   :  { %v682_v56 = vadd.f32 %v708_v54, %v677_v55 }
 0x126   :  { %683 = vst [vmem:[#allocation8] sm:$0x3] %v682_v56 }
 0x127   :  { %694 = dma.vmem_to_hbm [thread:$0]  %s690_s25, 32, %s692_s28, [#allocation5]  }
 0x128   :  { %785 = dma.done.wait [#allocation5], 32  }
 0x129   :  { %786 = vsyncadd [#allocation5], 4294967264 }
 0x12a   :  { %699 = vsyncpa [#allocation4], 1 }
 0x12b   :  { %700 = vsyncpa [#allocation7], 1 }
 0x12c   :  { %701 = vsyncpa [#allocation5], 1 }

</bundles_post_ra>
